<compile_context>
chip_gen: v6e
topology: v6e:2x2x1
jax: 0.10.0
libtpu: 0.0.40
codegen_flags: <defaults>
</compile_context>

<pallas_src>
import jax
import jax.numpy as jnp
from jax.experimental import pallas as pl
from jax.experimental.pallas import tpu as pltpu

S, M, K, N = 4, 24, 40, 14   # shards, rows of X, contraction dim, per-shard out dim
SN = S * N                   # fused output width (56)


def _model_kernel(x_ref, w_ref, z_ref, loss_ref):
    # x_ref: (M, K) VMEM, w_ref: (K, S*N) VMEM   (W in its native fused layout)
    # z_ref: (M, S*N) VMEM, loss_ref: (1, 1) SMEM scalar
    z2 = jnp.dot(x_ref[...], w_ref[...], preferred_element_type=jnp.float32)  # (M, SN)
    z_ref[...] = z2                                     # one lane-dense store
    # mean over all elements of Z  (poptorch.identity_loss(Z**2, 'mean'))
    loss_ref[0, 0] = jnp.sum(z2 * z2) * jnp.float32(1.0 / (S * M * N))


_pallas_forward = pl.pallas_call(
    _model_kernel,
    out_shape=(
        jax.ShapeDtypeStruct((M, SN), jnp.float32),
        jax.ShapeDtypeStruct((1, 1), jnp.float32),
    ),
    in_specs=[
        pl.BlockSpec(memory_space=pltpu.MemorySpace.VMEM),   # X  (M, K)
        pl.BlockSpec(memory_space=pltpu.MemorySpace.VMEM),   # W  (K, S*N)
    ],
    out_specs=(
        pl.BlockSpec(memory_space=pltpu.MemorySpace.VMEM),   # Z2 (M, S*N)
        pl.BlockSpec(memory_space=pltpu.MemorySpace.SMEM),   # scalar loss
    ),
    cost_estimate=pl.CostEstimate(
        flops=2 * M * K * SN,
        transcendentals=0,
        bytes_accessed=(M * K + K * SN + M * SN + 1) * 4,
    ),
)


def sharded_to_fused(w_sharded):
    """One-time layout conversion: module (S, K, N) parameter -> native (K, S*N)."""
    return jnp.transpose(w_sharded, (1, 0, 2)).reshape(K, SN)


@jax.jit
def model_with_loss_fused(x, w_fused):
    """Hot path.  x: (M, K) f32, w_fused: (K, S*N) f32 (native parameter layout).

    Returns (Z, loss) exactly like ModelWithLoss.forward:
      Z    : (S, M, N) f32
      loss : scalar f32 = mean(Z**2)
    """
    z2, loss = _pallas_forward(x, w_fused)
    # Recover the module's (S, M, N) view: Z[s, m, n] = Z2[m, s*N + n].
    # Fused by XLA with the pallas custom-call output inside this jit.
    z = jnp.transpose(z2.reshape(M, S, N), (1, 0, 2))
    return z, loss[0, 0]


@jax.jit
def model_with_loss(x, w_sharded):
    """Compatibility wrapper for callers holding the (S, K, N) parameter view.

    The W layout transform is inside the same jit, so for a static/constant
    parameter XLA folds or fuses it rather than dispatching a separate op.
    """
    return model_with_loss_fused(x, sharded_to_fused(w_sharded))


if __name__ == "__main__":
    key = jax.random.PRNGKey(0)
    kw, kx = jax.random.split(key)

    # Parameter is stored in its NATIVE fused (K, S*N) layout, mirroring the
    # module's prob_W_init of shape (40, 56) scaled by (5*8)**-0.5.
    w_fused = jax.random.normal(kw, (K, SN), dtype=jnp.float32) * (5 * 8) ** (-0.5)
    x = jax.random.normal(kx, (M, K), dtype=jnp.float32)        # (M, K)

    # Hot path: no per-call layout ops outside the jit.
    z, loss = model_with_loss_fused(x, w_fused)
    jax.block_until_ready((z, loss))

    # Pure-JAX reference check against the module semantics (Z = X @ W per shard).
    w_sharded = jnp.transpose(w_fused.reshape(K, S, N), (1, 0, 2))      # (S, K, N)
    z_ref = jnp.einsum("mk,skn->smn", x, w_sharded)
    loss_ref = jnp.mean(z_ref ** 2)
    assert z.shape == (S, M, N) and loss.shape == ()
    assert jnp.allclose(z, z_ref, atol=1e-4, rtol=1e-4)
    assert jnp.allclose(loss, loss_ref, atol=1e-5, rtol=1e-4)

    # Also exercise the (S, K, N)-view compatibility wrapper once.
    z2_view, loss2 = model_with_loss(x, w_sharded)
    jax.block_until_ready((z2_view, loss2))
    assert jnp.allclose(z2_view, z_ref, atol=1e-4, rtol=1e-4)
    assert jnp.allclose(loss2, loss_ref, atol=1e-5, rtol=1e-4)

    print("KERNEL_OK")
</pallas_src>

<mosaic_0001>
module attributes {stable_mosaic.version = 11 : i64} {
  func.func @_model_kernel(%arg0: memref<24x40xf32, #tpu.memory_space<vmem>>, %arg1: memref<40x56xf32, #tpu.memory_space<vmem>>, %arg2: memref<24x56xf32, #tpu.memory_space<vmem>>, %arg3: memref<1x1xf32, #tpu.memory_space<smem>>) attributes {dimension_semantics = [], scalar_prefetch = 0 : i64, scratch_operands = 0 : i64, tpu.core_type = #tpu.core_type<tc>} {
    %c0 = arith.constant 0 : index
    %c0_0 = arith.constant 0 : index
    %0 = vector.load %arg0[%c0, %c0_0] : memref<24x40xf32, #tpu.memory_space<vmem>>, vector<24x40xf32>
    %c0_1 = arith.constant 0 : index
    %c0_2 = arith.constant 0 : index
    %1 = vector.load %arg1[%c0_1, %c0_2] : memref<40x56xf32, #tpu.memory_space<vmem>>, vector<40x56xf32>
    %cst = arith.constant dense<0.000000e+00> : vector<24x56xf32>
    %2 = tpu.matmul %0, %1, %cst {dimension_numbers = #tpu.dot_dimension_numbers<[1], [0], [0], [1], [0, 0, 1, 1], [], []>} : vector<24x40xf32>, vector<40x56xf32>, vector<24x56xf32> -> vector<24x56xf32>
    %c0_3 = arith.constant 0 : index
    %c0_4 = arith.constant 0 : index
    %3 = vector.load %arg2[%c0_3, %c0_4] : memref<24x56xf32, #tpu.memory_space<vmem>>, vector<24x56xf32>
    tpu.vector_store %arg2[%c0_3, %c0_4], %2 {strides = array<i32>} : memref<24x56xf32, #tpu.memory_space<vmem>>, vector<24x56xf32>,
    %4 = arith.mulf %2, %2 : vector<24x56xf32>
    %5 = vector.shape_cast %4 : vector<24x56xf32> to vector<1x24x56xf32>
    %cst_5 = arith.constant dense<0.000000e+00> : vector<1xf32>
    %6 = vector.multi_reduction <add>, %5, %cst_5 [1, 2] : vector<1x24x56xf32> to vector<1xf32>
    %7 = vector.shape_cast %6 : vector<1xf32> to vector<1x1x1xf32>
    %8 = vector.extract %7[0, 0, 0] : f32 from vector<1x1x1xf32>
    %cst_6 = arith.constant 7.44047633E-4 : f32
    %9 = arith.mulf %8, %cst_6 : f32
    %c0_7 = arith.constant 0 : index
    %c0_8 = arith.constant 0 : index
    %10 = memref.load %arg3[%c0_7, %c0_8] : memref<1x1xf32, #tpu.memory_space<smem>>
    memref.store %9, %arg3[%c0_7, %c0_8] : memref<1x1xf32, #tpu.memory_space<smem>>
    return
  }
}

</mosaic_0001>

<bundles_post_ra>
// kernel: model_with_loss_fused.1
= control target key start
LH: loop header
LB: loop body
LE: loop exit
PB: predicated region body
PF: predicated region fallthrough
CT: control target
= control target key end

     0   :  { %9 = vsyncpa [#allocation3], 0  ;;  %s340_s0 = inlined_call_operand.hbm [shape: f32[24,40], index: 0, kind: input, shape index: {}]   ;;  %s341_s1 = inlined_call_operand.hbm [shape: f32[40,56], index: 1, kind: input, shape index: {}]   ;;  %s342_s2 = inlined_call_operand.vmem [shape: f32[24,56], index: 2, kind: output, shape index: {0}]   ;;  %s343_s3 = inlined_call_operand.hbm [shape: f32[1,1], index: 3, kind: output, shape index: {1}]  }
   0x1   :  { %10 = vsyncpa [#allocation6], 0 }
   0x2   :  { %11 = vsyncpa [#allocation4], 0  ;;  %s286_s12 = smov [#allocation2]  }
   0x3   :  { %s17_s13 = sshll.u32 %s286_s12, 4  ;;  %s18_s13 = int_to_ptr.vmem [resolvable:$true] %s17_s13 }
   0x4   :  { %s240_s14 = scalar_lea.vmem %s18_s13, 384  ;;  %p245_p1 = scmp.lt.s32.totalorder %s18_s13, %s18_s13 }
   0x5   :  { %p241_p0 = scmp.ne.s32.totalorder %s18_s13, %s240_s14  ;;  %p246_p2 = scmp.lt.s32.totalorder %s240_s14, %s240_s14 }
   0x7   :  { %p247_p3 = por %p246_p2, %p245_p1 }
   0x9   :  { %p248_p4 = pnand %p247_p3, %p241_p0 }
   0xb   :  { %251 = shalt.err (!%p248_p4)
}
   0xc   :  { %s287_s15 = smov 128   ;;  %s288_s16 = smov 8  }
   0xd   :  { %23 = dma.hbm_to_vmem [thread:$0]  %s340_s0, 384, %s18_s13, [#allocation3], %s287_s15, %s287_s15, %s288_s16  }
   0xe   :  { %s289_s19 = smov [#allocation5]  }
   0xf   :  { %s29_s20 = sshll.u32 %s289_s19, 4  ;;  %s30_s20 = int_to_ptr.vmem [resolvable:$true] %s29_s20 }
  0x10   :  { %s260_s21 = scalar_lea.vmem %s30_s20, 640  ;;  %p265_p6 = scmp.lt.s32.totalorder %s30_s20, %s30_s20 }
  0x11   :  { %p261_p5 = scmp.ne.s32.totalorder %s30_s20, %s260_s21  ;;  %p266_p7 = scmp.lt.s32.totalorder %s260_s21, %s260_s21 }
  0x13   :  { %p267_p8 = por %p266_p7, %p265_p6 }
  0x15   :  { %p268_p9 = pnand %p267_p8, %p261_p5 }
  0x17   :  { %271 = shalt.err (!%p268_p9)
}
  0x18   :  { %35 = dma.hbm_to_vmem [thread:$0]  %s341_s1, 640, %s30_s20, [#allocation6], %s287_s15, %s287_s15, %s288_s16  }
  0x19   :  { %280 = dma.done.wait [#allocation3], 384  }
  0x1a   :  { %281 = vsyncadd [#allocation3], 4294966912 }
  0x1b   :  { %282 = dma.done.wait [#allocation6], 640  }
  0x1c   :  { %283 = vsyncadd [#allocation6], 4294966656  ;;  %v290_v0 = vmov 0.0   ;;  %vm291_vm0 = vmmov 0   ;;  %v49_v1 = vld [vmem:[#allocation5 + $0x20] sm:$0xff]  ;;  %v48_v2 = vld [vmem:[#allocation5 + $0x18] sm:$0xff] }
  0x1d   :  { %194 = vmatprep.subr.mxu0 %v290_v0  ;;  %213 = vmatprep.subr.mxu1 %v290_v0  ;;  %v47_v3 = vld [vmem:[#allocation5 + $0x10] sm:$0xff]  ;;  %v46_v4 = vld [vmem:[#allocation5 + $0x8] sm:$0xff]  ;;  %v45_v5 = vld [vmem:[#allocation5] sm:$0xff]  ;;  %vm50_vm1 = vcmask 326656   ;;  %vm140_vm2 = vcmask 457728   ;;  %s292_s30 = smov [#allocation7]  }
  0x1e   :  { %204 = vmatprep.mubr.msk.f32.mxu0 %vm291_vm0, %v290_v0  ;;  %207 = vmatprep.mubr.msk.f32.mxu1 %vm291_vm0, %v290_v0  ;;  %v42_v6 = vld [vmem:[#allocation2] sm:$0xff]  ;;  %v43_v7 = vld [vmem:[#allocation2 + $0x8] sm:$0xff]  ;;  %v44_v8 = vld [vmem:[#allocation2 + $0x10] sm:$0xff] }
  0x1f   :  { %195 = vmatpush3.msra.mxu0 %v49_v1  ;;  %218 = vmatpush3.msra.mxu1 %v49_v1 }
  0x20   :  { %196 = vmatprep.subr.mxu0 %v290_v0  ;;  %214 = vmatprep.subr.mxu1 %v290_v0 }
  0x21   :  { %197 = vmatpush3.msra.mxu0 %v48_v2  ;;  %219 = vmatpush3.msra.mxu1 %v48_v2 }
  0x22   :  { %198 = vmatprep.subr.mxu0 %v290_v0  ;;  %215 = vmatprep.subr.mxu1 %v290_v0 }
  0x23   :  { %199 = vmatpush3.msra.mxu0 %v47_v3  ;;  %220 = vmatpush3.msra.mxu1 %v47_v3 }
  0x24   :  { %200 = vmatprep.subr.mxu0 %v290_v0  ;;  %216 = vmatprep.subr.mxu1 %v290_v0 }
  0x25   :  { %201 = vmatpush3.msra.mxu0 %v46_v4  ;;  %221 = vmatpush3.msra.mxu1 %v46_v4 }
  0x26   :  { %202 = vmatprep.subr.mxu0 %v290_v0  ;;  %217 = vmatprep.subr.mxu1 %v290_v0 }
  0x27   :  { %203 = vmatpush3.msra.mxu0 %v45_v5  ;;  %222 = vmatpush3.msra.mxu1 %v45_v5 }
  0x28   :  { %205 = vmatmul.mubr.msk.f32.vlgmr.msra.gmra.mxu0 %vm50_vm1, %v42_v6  ;;  %208 = vmatmul.mubr.msk.f32.vlgmr.msra.gmra.mxu1 %vm50_vm1, %v43_v7 }
  0x29   :  { %210 = vmatprep.mubr.msk.f32.mxu1 %vm291_vm0, %v290_v0 }
  0x2c   :  { %211 = vmatmul.mubr.msk.f32.gmra.mxu1 %vm50_vm1, %v44_v8 }
  0xe8   :  { %v126_v9 = vpop.f32.mrf.mxu0  ;;  %v131_v10 = vpop.f32.mrf.mxu1 }
  0xe9   :  { %141 = vst.msk [vmem:[%s342_s2] sm:$0xff] %vm140_vm2, %v126_v9  ;;  %v144_v11 = vmul.f32 %v126_v9, %v126_v9  ;;  %142 = vst.msk [vmem:[%s342_s2 + $0x8] sm:$0xff] %vm140_vm2, %v131_v10  ;;  %v145_v12 = vmul.f32 %v131_v10, %v131_v10 }
  0xea   :  { %v206_v13 = vpop.f32.mrf.mxu0  ;;  %v209_v14 = vpop.f32.mrf.mxu1 }
  0xeb   :  { %v147_v15 = vsel %vm140_vm2, %v144_v11, 0.0  ;;  %v148_v16 = vsel %vm140_vm2, %v145_v12, 0.0 }
  0xec   :  { %v136_v17 = vpop.f32.mrf.mxu1  ;;  %v149_v20 = vadd.f32 %v148_v16, %v147_v15 }
  0xed   :  { %143 = vst.msk [vmem:[%s342_s2 + $0x10] sm:$0xff] %vm140_vm2, %v136_v17  ;;  %v146_v18 = vmul.f32 %v136_v17, %v136_v17 }
  0xee   :  { %v212_v19 = vpop.f32.mrf.mxu1 }
  0xef   :  { %v150_v21 = vsel %vm140_vm2, %v146_v18, 0.0 }
  0xf0   :  { %v151_v22 = vadd.f32 %v150_v21, %v149_v20 }
  0xf2   :  { %152 = vadd.xlane.f32.xlu0 %v151_v22 }
 0x17b   :  { %v153_v23 = vpop.xlane.xlu0 %152 }
 0x17c   :  { %v154_v24 = vrot.slane %v153_v23, 4 }
 0x17e   :  { %v155_v25 = vadd.f32 %v154_v24, %v153_v23 }
 0x180   :  { %v156_v26 = vrot.slane %v155_v25, 2 }
 0x182   :  { %v157_v27 = vadd.f32 %v156_v26, %v155_v25 }
 0x184   :  { %v158_v28 = vrot.slane %v157_v27, 1 }
 0x186   :  { %v159_v29 = vadd.f32 %v158_v28, %v157_v27 }
 0x188   :  { %223 = vpush %v159_v29 }
 0x1b9   :  { %s224_s28 = spop %223 }
 0x1ba   :  { %s161_s29 = smul.f32 0.00074404763, %s224_s28 }
 0x1bc   :  { %163 = sst [smem:[#allocation7]] %s161_s29 }
 0x1bd   :  { %173 = dma.smem_to_hbm %s292_s30, 16, %s343_s3, [#allocation4]  }
 0x1be   :  { %284 = dma.done.wait [#allocation4], 16  }
 0x1bf   :  { %285 = vsyncadd [#allocation4], 4294967280 }
 0x1c0   :  { %179 = sfence }
 0x1c1   :  { %180 = vsyncpa [#allocation3], 1 }
 0x1c2   :  { %181 = vsyncpa [#allocation6], 1 }
 0x1c3   :  { %182 = vsyncpa [#allocation4], 1 }

</bundles_post_ra>
